<compile_context>
chip_gen: v7x
topology: tpu7x:2x2x1
jax: 0.10.0
libtpu: 0.0.40
codegen_flags: <defaults>
</compile_context>

<pallas_src>
import jax
import jax.numpy as jnp
from jax import lax
from jax.experimental import pallas as pl
from jax.experimental.pallas import tpu as pltpu


def _nce_kernel(inv_temp_ref, ids_col_ref, ids_row_ref, x1_ref, x2_ref,
                loss_ref, x_cat_ref):
    b, _ = x1_ref.shape
    n = 2 * b

    # Stack [x1; x2] into the [2B, H] VMEM scratch (native dtype -> MXU).
    x_cat_ref[0:b, :] = x1_ref[...]
    x_cat_ref[b:n, :] = x2_ref[...]
    x = x_cat_ref[...]

    # Single Gram matrix S = X @ X.T with f32 accumulation on the MXU.
    dn = (((1,), (1,)), ((), ()))
    s = lax.dot_general(x, x, dn, preferred_element_type=jnp.float32)  # [2B,2B]

    # Mask built in-kernel:
    #   mask[i, j] = (ids2[i] == ids2[j]) and (j != (i + B) mod 2B)
    # With intent_ids this reproduces the same-intent masking of sim11/sim22
    # and the (same-intent minus diagonal) masking of sim12/sim12.T; with
    # ids = arange(B) it reduces to masking only the self-similarity diagonal.
    # The positive pair (column (i+B) mod 2B) is never masked.
    same = ids_col_ref[...] == ids_row_ref[...]                       # [2B,2B]
    row_ids = lax.broadcasted_iota(jnp.int32, (n, n), 0)
    col_ids = lax.broadcasted_iota(jnp.int32, (n, n), 1)
    is_target = ((col_ids - row_ids) == b) | ((row_ids - col_ids) == b)
    mask = same & jnp.logical_not(is_target)

    inv_t = inv_temp_ref[0, 0]
    logits = jnp.where(mask, -jnp.inf, s * inv_t)      # fused scale + mask pass

    # Row-wise logsumexp (CE denominator).  The column permutation relative to
    # the original [sim12|sim11 ; sim22|sim12.T] layout does not affect it.
    row_max = jnp.max(logits, axis=-1, keepdims=True)
    lse = jnp.log(jnp.sum(jnp.exp(logits - row_max), axis=-1,
                          keepdims=True)) + row_max                    # [2B,1]

    # Sum of positive logits: each x1[i].x2[i]/t appears in exactly two rows.
    pos_sum = 2.0 * inv_t * jnp.sum(
        x1_ref[...].astype(jnp.float32) * x2_ref[...].astype(jnp.float32))

    # CrossEntropy with labels = arange(2B), reduction='mean'.
    loss_ref[0, 0] = (jnp.sum(lse) - pos_sum) / jnp.float32(n)


def nce_loss(batch_sample_one, batch_sample_two, temperature, intent_ids=None):
    """Pallas implementation of NCELoss.forward (scalar f32 loss)."""
    b, h = batch_sample_one.shape
    if intent_ids is None:
        # All-distinct ids reproduce the eye-only masking of the no-intent path.
        ids = jnp.arange(b, dtype=jnp.int32)
    else:
        ids = intent_ids.astype(jnp.int32).reshape(-1)
    ids2 = jnp.concatenate([ids, ids])                    # [2B], O(B) bytes DMA
    ids_col = ids2.reshape(2 * b, 1)
    ids_row = ids2.reshape(1, 2 * b)
    inv_temp = jnp.asarray(1.0 / temperature, dtype=jnp.float32).reshape(1, 1)

    # TODO(synk): for very large B (where the [2B,2B] scores no longer fit
    # v7x's 64 MiB VMEM) switch to a row-block grid with an online-LSE
    # accumulator and dimension_semantics=("parallel",) so both v7x
    # TensorCores split the row blocks.
    out = pl.pallas_call(
        _nce_kernel,
        out_shape=jax.ShapeDtypeStruct((1, 1), jnp.float32),
        in_specs=[
            pl.BlockSpec(memory_space=pltpu.MemorySpace.SMEM),   # 1/temperature
            pl.BlockSpec(memory_space=pltpu.MemorySpace.VMEM),   # ids column
            pl.BlockSpec(memory_space=pltpu.MemorySpace.VMEM),   # ids row
            pl.BlockSpec(memory_space=pltpu.MemorySpace.VMEM),   # x1
            pl.BlockSpec(memory_space=pltpu.MemorySpace.VMEM),   # x2
        ],
        out_specs=pl.BlockSpec(memory_space=pltpu.MemorySpace.SMEM),
        scratch_shapes=[pltpu.VMEM((2 * b, h), batch_sample_one.dtype)],
    )(inv_temp, ids_col, ids_row, batch_sample_one, batch_sample_two)
    return out[0, 0]


def _nce_loss_ref(x1, x2, temperature, intent_ids=None):
    """Pure-JAX reference mirroring the PyTorch forward."""
    t = temperature
    sim11 = x1 @ x1.T / t
    sim22 = x2 @ x2.T / t
    sim12 = x1 @ x2.T / t
    b = sim12.shape[-1]
    eye = jnp.eye(b)
    if intent_ids is None:
        sim11 = jnp.where(eye == 1, -jnp.inf, sim11)
        sim22 = jnp.where(eye == 1, -jnp.inf, sim22)
    else:
        ids = intent_ids.reshape(-1, 1)
        m = (ids == ids.T).astype(jnp.float32)
        sim11 = jnp.where(m == 1, -jnp.inf, sim11)
        sim22 = jnp.where(m == 1, -jnp.inf, sim22)
        m = m * (1 - eye)
        sim12 = jnp.where(m == 1, -jnp.inf, sim12)
    logits = jnp.concatenate(
        [jnp.concatenate([sim12, sim11], axis=-1),
         jnp.concatenate([sim22, sim12.T], axis=-1)], axis=-2)
    labels = jnp.arange(2 * b)
    logp = jax.nn.log_softmax(logits, axis=-1)
    return -jnp.mean(logp[jnp.arange(2 * b), labels])


if __name__ == "__main__":
    B, H = 8, 32
    temperature = 0.5
    key = jax.random.PRNGKey(0)
    k1, k2, k3 = jax.random.split(key, 3)
    x1 = jax.random.normal(k1, (B, H), dtype=jnp.float32)
    x2 = jax.random.normal(k2, (B, H), dtype=jnp.float32)
    intent_ids = jax.random.randint(k3, (B,), 0, 3, dtype=jnp.int32)

    # Case 1: intent_ids=None
    loss = jax.block_until_ready(nce_loss(x1, x2, temperature))
    ref = _nce_loss_ref(x1, x2, temperature)
    assert jnp.allclose(loss, ref, rtol=1e-5, atol=1e-5), (loss, ref)

    # Case 2: with intent_ids
    loss_i = jax.block_until_ready(nce_loss(x1, x2, temperature, intent_ids))
    ref_i = _nce_loss_ref(x1, x2, temperature, intent_ids)
    assert jnp.allclose(loss_i, ref_i, rtol=1e-5, atol=1e-5), (loss_i, ref_i)

    print("KERNEL_OK")
</pallas_src>

<mosaic_0001>
module attributes {stable_mosaic.version = 11 : i64} {
  func.func @_nce_kernel(%arg0: memref<1x1xf32, #tpu.memory_space<smem>>, %arg1: memref<16x1xi32, #tpu.memory_space<vmem>>, %arg2: memref<1x16xi32, #tpu.memory_space<vmem>>, %arg3: memref<8x32xf32, #tpu.memory_space<vmem>>, %arg4: memref<8x32xf32, #tpu.memory_space<vmem>>, %arg5: memref<1x1xf32, #tpu.memory_space<smem>>, %arg6: memref<16x32xf32, #tpu.memory_space<vmem>>) attributes {dimension_semantics = [], scalar_prefetch = 0 : i64, scratch_operands = 1 : i64, tpu.core_type = #tpu.core_type<tc>} {
    %c0 = arith.constant 0 : index
    %c0_0 = arith.constant 0 : index
    %0 = vector.load %arg3[%c0, %c0_0] : memref<8x32xf32, #tpu.memory_space<vmem>>, vector<8x32xf32>
    %c0_1 = arith.constant 0 : index
    %c0_2 = arith.constant 0 : index
    %1 = vector.load %arg6[%c0_1, %c0_2] : memref<16x32xf32, #tpu.memory_space<vmem>>, vector<8x32xf32>
    tpu.vector_store %arg6[%c0_1, %c0_2], %0 {strides = array<i32>} : memref<16x32xf32, #tpu.memory_space<vmem>>, vector<8x32xf32>,
    %c0_3 = arith.constant 0 : index
    %c0_4 = arith.constant 0 : index
    %2 = vector.load %arg4[%c0_3, %c0_4] : memref<8x32xf32, #tpu.memory_space<vmem>>, vector<8x32xf32>
    %c8 = arith.constant 8 : index
    %c0_5 = arith.constant 0 : index
    %3 = vector.load %arg6[%c8, %c0_5] : memref<16x32xf32, #tpu.memory_space<vmem>>, vector<8x32xf32>
    tpu.vector_store %arg6[%c8, %c0_5], %2 {strides = array<i32>} : memref<16x32xf32, #tpu.memory_space<vmem>>, vector<8x32xf32>,
    %c0_6 = arith.constant 0 : index
    %c0_7 = arith.constant 0 : index
    %4 = vector.load %arg6[%c0_6, %c0_7] : memref<16x32xf32, #tpu.memory_space<vmem>>, vector<16x32xf32>
    %cst = arith.constant dense<0.000000e+00> : vector<16x16xf32>
    %5 = tpu.matmul %4, %4, %cst {dimension_numbers = #tpu.dot_dimension_numbers<[1], [1], [0], [0], [0, 0, 1, 0], [], []>} : vector<16x32xf32>, vector<16x32xf32>, vector<16x16xf32> -> vector<16x16xf32>
    %c0_8 = arith.constant 0 : index
    %c0_9 = arith.constant 0 : index
    %6 = vector.load %arg1[%c0_8, %c0_9] : memref<16x1xi32, #tpu.memory_space<vmem>>, vector<16x1xi32>
    %c0_10 = arith.constant 0 : index
    %c0_11 = arith.constant 0 : index
    %7 = vector.load %arg2[%c0_10, %c0_11] : memref<1x16xi32, #tpu.memory_space<vmem>>, vector<1x16xi32>
    %8 = vector.broadcast %6 : vector<16x1xi32> to vector<16x16xi32>
    %9 = vector.broadcast %7 : vector<1x16xi32> to vector<16x16xi32>
    %10 = arith.cmpi eq, %8, %9 : vector<16x16xi32>
    %11 = tpu.iota {dimensions = array<i32: 0>} : vector<16x16xi32>
    %12 = tpu.iota {dimensions = array<i32: 1>} : vector<16x16xi32>
    %13 = arith.subi %12, %11 : vector<16x16xi32>
    %c8_i32 = arith.constant 8 : i32
    %14 = vector.broadcast %c8_i32 : i32 to vector<16x16xi32>
    %15 = arith.cmpi eq, %13, %14 : vector<16x16xi32>
    %16 = arith.subi %11, %12 : vector<16x16xi32>
    %c8_i32_12 = arith.constant 8 : i32
    %17 = vector.broadcast %c8_i32_12 : i32 to vector<16x16xi32>
    %18 = arith.cmpi eq, %16, %17 : vector<16x16xi32>
    %19 = arith.ori %15, %18 : vector<16x16xi1>
    %cst_13 = arith.constant dense<true> : vector<16x16xi1>
    %20 = arith.xori %19, %cst_13 : vector<16x16xi1>
    %21 = arith.andi %10, %20 : vector<16x16xi1>
    %c0_14 = arith.constant 0 : index
    %c0_15 = arith.constant 0 : index
    %22 = memref.load %arg0[%c0_14, %c0_15] : memref<1x1xf32, #tpu.memory_space<smem>>
    %23 = vector.broadcast %22 : f32 to vector<16x16xf32>
    %24 = arith.mulf %5, %23 : vector<16x16xf32>
    %cst_16 = arith.constant 0xFF800000 : f32
    %25 = vector.broadcast %cst_16 : f32 to vector<16x16xf32>
    %26 = arith.select %21, %25, %24 : vector<16x16xi1>, vector<16x16xf32>
    %cst_17 = arith.constant dense<0xFF800000> : vector<16xf32>
    %27 = vector.multi_reduction <maximumf>, %26, %cst_17 [1] : vector<16x16xf32> to vector<16xf32>
    %28 = vector.shape_cast %27 : vector<16xf32> to vector<16x1xf32>
    %29 = vector.broadcast %28 : vector<16x1xf32> to vector<16x16xf32>
    %30 = arith.subf %26, %29 : vector<16x16xf32>
    %31 = math.exp %30 : vector<16x16xf32>
    %cst_18 = arith.constant dense<0.000000e+00> : vector<16xf32>
    %32 = vector.multi_reduction <add>, %31, %cst_18 [1] : vector<16x16xf32> to vector<16xf32>
    %33 = vector.shape_cast %32 : vector<16xf32> to vector<16x1xf32>
    %34 = math.log %33 : vector<16x1xf32>
    %35 = arith.addf %34, %28 : vector<16x1xf32>
    %cst_19 = arith.constant 2.000000e+00 : f32
    %36 = arith.mulf %cst_19, %22 : f32
    %c0_20 = arith.constant 0 : index
    %c0_21 = arith.constant 0 : index
    %37 = vector.load %arg3[%c0_20, %c0_21] : memref<8x32xf32, #tpu.memory_space<vmem>>, vector<8x32xf32>
    %c0_22 = arith.constant 0 : index
    %c0_23 = arith.constant 0 : index
    %38 = vector.load %arg4[%c0_22, %c0_23] : memref<8x32xf32, #tpu.memory_space<vmem>>, vector<8x32xf32>
    %39 = arith.mulf %37, %38 : vector<8x32xf32>
    %40 = vector.shape_cast %39 : vector<8x32xf32> to vector<1x8x32xf32>
    %cst_24 = arith.constant dense<0.000000e+00> : vector<1xf32>
    %41 = vector.multi_reduction <add>, %40, %cst_24 [1, 2] : vector<1x8x32xf32> to vector<1xf32>
    %42 = vector.shape_cast %41 : vector<1xf32> to vector<1x1x1xf32>
    %43 = vector.extract %42[0, 0, 0] : f32 from vector<1x1x1xf32>
    %44 = arith.mulf %36, %43 : f32
    %45 = vector.shape_cast %35 : vector<16x1xf32> to vector<1x16x1xf32>
    %cst_25 = arith.constant dense<0.000000e+00> : vector<1xf32>
    %46 = vector.multi_reduction <add>, %45, %cst_25 [1, 2] : vector<1x16x1xf32> to vector<1xf32>
    %47 = vector.shape_cast %46 : vector<1xf32> to vector<1x1x1xf32>
    %48 = vector.extract %47[0, 0, 0] : f32 from vector<1x1x1xf32>
    %49 = arith.subf %48, %44 : f32
    %cst_26 = arith.constant 1.600000e+01 : f32
    %50 = arith.divf %49, %cst_26 : f32
    %c0_27 = arith.constant 0 : index
    %c0_28 = arith.constant 0 : index
    %51 = memref.load %arg5[%c0_27, %c0_28] : memref<1x1xf32, #tpu.memory_space<smem>>
    memref.store %50, %arg5[%c0_27, %c0_28] : memref<1x1xf32, #tpu.memory_space<smem>>
    return
  }
}

</mosaic_0001>

<bundles_post_ra>
// kernel: tpu_custom_call.1
= control target key start
LH: loop header
LB: loop body
LE: loop exit
PB: predicated region body
PF: predicated region fallthrough
CT: control target
= control target key end

     0   :  { %vm23_vm0 = vcmask 261120   ;;  %v272_v3 = vmov 0   ;;  %s357_s0 = inlined_call_operand.<no memory space> [shape: f32[1,1], index: 0, kind: input, shape index: {}]   ;;  %s358_s1 = inlined_call_operand.vmem [shape: s32[16,1], index: 1, kind: input, shape index: {}]   ;;  %s359_s2 = inlined_call_operand.vmem [shape: s32[1,16], index: 2, kind: input, shape index: {}]   ;;  %s360_s3 = inlined_call_operand.vmem [shape: f32[8,32], index: 3, kind: input, shape index: {}]   ;;  %s361_s4 = inlined_call_operand.vmem [shape: f32[8,32], index: 4, kind: input, shape index: {}]   ;;  %s362_s5 = inlined_call_operand.hbm [shape: f32[1,1], index: 5, kind: output, shape index: {}]  }
   0x1   :  { %v308_v0 = vld [vmem:[%s360_s3] sm:$0xff]  ;;  %251 = vset.pattern.permute.xlu0 %v272_v3 }
   0x2   :  { %v313_v1 = vld [vmem:[%s361_s4] sm:$0xff]  ;;  %24 = vst.msk [vmem:[#allocation2] sm:$0xff] %vm23_vm0, %v308_v0 }
   0x3   :  { %v110_v2 = vld [vmem:[%s358_s1] sm:$0xff]  ;;  %26 = vst.msk [vmem:[#allocation2 + $0x8] sm:$0xff] %vm23_vm0, %v313_v1 }
   0x4   :  { %114 = vperm.xlu0 %251, %v110_v2  }
   0x5   :  { %11 = vsyncpa [#allocation5], 0  ;;  %v111_v4 = vld [vmem:[%s358_s1 + $0x8] sm:$0xff]  ;;  %v125_v8 = vlaneseq  ;;  %v226_v16 = vld [vmem:[%s359_s2] ss:$0 sm:$0xff]  ;;  %vm273_vm6 = vmmov 1   ;;  %v145_v18 = vstv %s357_s0  ;;  %v178_v37 = vmul.f32 %v313_v1, %v308_v0 }
   0x6   :  { %vm239_vm1 = vmpackc.low %vm23_vm0, %vm23_vm0  ;;  %vm150_vm12 = vcmask 130048   ;;  %vm190_vm14 = vcmask 7168   ;;  %s175_s28 = smul.f32 2.0, %s357_s0  ;;  %s260_s11 = scalar_lea.hbm %s362_s5, 16 }
   0x7   :  { %v126_v9 = vshrl.u32 %v125_v8, 7  ;;  %v129_v10 = vand.u32 127, %v125_v8  ;;  %v179_v38 = vsel %vm23_vm0, %v178_v37, 0.0  ;;  %p261_p0 = scmp.ne.s32.totalorder %s362_s5, %s260_s11  ;;  %p264_p1 = scmp.lt.u32.totalorder %s260_s11, %s362_s5 }
   0x8   :  { %117 = vperm.xlu0 %251, %v111_v4  }
   0x9   :  { %v27_v5 = vld [vmem:[#allocation2] sm:$0xff]  ;;  %v127_v11 = vadd.s32 8, %v126_v9  ;;  %v130_v14 = vsub.s32 %v129_v10, %v126_v9  ;;  %p266_p2 = pnand %p264_p1, %p261_p0 }
   0xa   :  { %v28_v6 = vld [vmem:[#allocation2 + $0x8] sm:$0xff]  ;;  %235 = vmatprep.mubr.msk.f32.mxu0 %vm23_vm0, %v27_v5 }
   0xb   :  { %v238_v7 = vpack.c.bf16 %v28_v6, %v27_v5  ;;  %v131_v12 = vsub.s32 %v129_v10, %v127_v11  ;;  %v135_v13 = vsub.s32 %v127_v11, %v129_v10  ;;  %vm132_vm4 = vcmp.eq.s32.totalorder %v130_v14, 8 }
   0xc   :  { %vm140_vm7 = vmxor %vm132_vm4, %vm273_vm6 }
   0xd   :  { %240 = vmatprep.subr.msk.bf16.mxu0 %vm239_vm1, %v238_v7  ;;  %vm133_vm2 = vcmp.eq.s32.totalorder %v131_v12, 8  ;;  %vm137_vm3 = vcmp.eq.s32.totalorder %v135_v13, 8 }
   0xe   :  { %243 = vmatpush3.bf16.xpose.msk.msra.mxu0 %vm239_vm1, %v238_v7  ;;  %vm139_vm5 = vmor %vm133_vm2, %vm137_vm3 }
   0xf   :  { %vm141_vm9 = vmxor %vm139_vm5, %vm273_vm6 }
  0x15   :  { %236 = vmatmul.mubr.msk.f32.vlgmr.msra.gmra.mrb[0].mxu0 %vm23_vm0, %v28_v6 }
  0x83   :  { %v115_v15 = vpop.permute.xlu0 %114 }
  0x84   :  { %vm123_vm8 = vcmp.eq.s32.totalorder %v115_v15, %v226_v16 }
  0x85   :  { %vm142_vm11 = vmand %vm123_vm8, %vm140_vm7 }
  0x87   :  { %v118_v17 = vpop.permute.xlu0 %117 }
  0x88   :  { %vm124_vm10 = vcmp.eq.s32.totalorder %v118_v17, %v226_v16 }
  0x89   :  { %vm143_vm13 = vmand %vm124_vm10, %vm141_vm9 }
  0xe8   :  { %v237_v19 = vpop.f32.mrb[0].mxu0 }
  0xe9   :  { %v101_v20 = vpop.f32.mrb[1].mxu0  ;;  %v147_v21 = vmul.f32 %v237_v19, %v145_v18 }
  0xea   :  { %v146_v22 = vmul.f32 %v145_v18, %v101_v20 }
  0xeb   :  { %v149_v25 = vsel %vm143_vm13, -inf, %v147_v21 }
  0xec   :  { %v148_v23 = vsel %vm142_vm11, -inf, %v146_v22  ;;  %v154_v26 = vsel %vm150_vm12, %v149_v25, -inf }
  0xed   :  { %v151_v24 = vsel %vm150_vm12, %v148_v23, -inf }
  0xee   :  { %152 = vmax.xlane.f32.xlu1 %v151_v24 }
  0xf2   :  { %155 = vmax.xlane.f32.xlu1 %v154_v26 }
 0x17b   :  { %v153_v27 = vpop.xlane.xlu1 %152 }
 0x17c   :  { %v157_v28 = vsub.f32 %v148_v23, %v153_v27 }
 0x17e   :  { %v159_v29 = vmul.f32 1.442695, %v157_v28 }
 0x17f   :  { %v156_v30 = vpop.xlane.xlu1 %155 }
 0x180   :  { %252 = vpow2.f32 %v159_v29  ;;  %v158_v31 = vsub.f32 %v149_v25, %v156_v30 }
 0x182   :  { %v161_v32 = vmul.f32 1.442695, %v158_v31 }
 0x184   :  { %254 = vpow2.f32 %v161_v32 }
 0x18a   :  { %v253_v33 = vpop.eup %252 }
 0x18b   :  { %v163_v34 = vsel %vm150_vm12, %v253_v33, 0.0 }
 0x18c   :  { %164 = vadd.xlane.f32.xlu0 %v163_v34 }
 0x18e   :  { %v255_v35 = vpop.eup %254 }
 0x18f   :  { %v166_v36 = vsel %vm150_vm12, %v255_v35, 0.0 }
 0x190   :  { %167 = vadd.xlane.f32.xlu1 %v166_v36 }
 0x194   :  { %180 = vadd.xlane.f32.xlu1 %v179_v38 }
 0x219   :  { %v165_v39 = vpop.xlane.xlu0 %164 }
 0x21a   :  { %256 = vlog2.f32 %v165_v39 }
 0x21d   :  { %v168_v40 = vpop.xlane.xlu1 %167 }
 0x21e   :  { %258 = vlog2.f32 %v168_v40 }
 0x221   :  { %v181_v50 = vpop.xlane.xlu1 %180 }
 0x222   :  { %v182_v51 = vrot.slane %v181_v50, 4 }
 0x224   :  { %v257_v41 = vpop.eup %256  ;;  %v183_v52 = vadd.f32 %v182_v51, %v181_v50 }
 0x225   :  { %v170_v42 = vmul.f32 0.6931472, %v257_v41 }
 0x226   :  { %v184_v53 = vrot.slane %v183_v52, 2 }
 0x227   :  { %v173_v45 = vadd.f32 %v170_v42, %v153_v27 }
 0x228   :  { %v259_v43 = vpop.eup %258  ;;  %v185_v54 = vadd.f32 %v184_v53, %v183_v52 }
 0x229   :  { %v172_v44 = vmul.f32 0.6931472, %v259_v43  ;;  %v191_v47 = vsel %vm190_vm14, %v173_v45, 0.0 }
 0x22a   :  { %v186_v55 = vrot.slane %v185_v54, 1 }
 0x22b   :  { %v174_v46 = vadd.f32 %v172_v44, %v156_v30 }
 0x22c   :  { %v187_v56 = vadd.f32 %v186_v55, %v185_v54 }
 0x22d   :  { %v192_v48 = vsel %vm190_vm14, %v174_v46, 0.0 }
 0x22e   :  { %v193_v49 = vadd.f32 %v192_v48, %v191_v47  ;;  %244 = vpush %v187_v56 }
 0x230   :  { %194 = vadd.xlane.f32.xlu1 %v193_v49 }
 0x25f   :  { %s245_s29 = spop %244 }
 0x260   :  { %s189_s30 = smul.f32 %s245_s29, %s175_s28 }
 0x2bd   :  { %v195_v57 = vpop.xlane.xlu1 %194 }
 0x2be   :  { %v196_v58 = vrot.slane %v195_v57, 4 }
 0x2c0   :  { %v197_v59 = vadd.f32 %v196_v58, %v195_v57 }
 0x2c2   :  { %v198_v60 = vrot.slane %v197_v59, 2 }
 0x2c4   :  { %v199_v61 = vadd.f32 %v198_v60, %v197_v59 }
 0x2c6   :  { %v200_v62 = vrot.slane %v199_v61, 1 }
 0x2c8   :  { %v201_v63 = vadd.f32 %v200_v62, %v199_v61 }
 0x2ca   :  { %246 = vpush %v201_v63 }
 0x2fb   :  { %s247_s6 = spop %246 }
 0x2fc   :  { %s203_s7 = ssub.f32 %s247_s6, %s189_s30 }
 0x2fe   :  { %s206_s8 = smul.f32 0.0625, %s203_s7 }
 0x300   :  { %208 = sst [smem:[#allocation4]] %s206_s8 }
 0x301   :  { %269 = shalt.err (!%p266_p2)
}
 0x302   :  { %s274_s0 = smov [#allocation4]  }
 0x303   :  { %216 = dma.smem_to_hbm %s274_s0, 16, %s362_s5, [#allocation5]  }
 0x304   :  { %270 = dma.done.wait [#allocation5], 16  }
 0x305   :  { %271 = vsyncadd [#allocation5], 4294967280 }
 0x306   :  { %220 = sfence }
 0x307   :  { %221 = vsyncpa [#allocation5], 1 }

</bundles_post_ra>
